<compile_context>
chip_gen: v6e
topology: v6e:2x2x1
jax: 0.10.0
libtpu: 0.0.40
codegen_flags: <defaults>
</compile_context>

<pallas_src>
import numpy as np
import jax
import jax.numpy as jnp
from jax.experimental import pallas as pl
from jax.experimental.pallas import tpu as pltpu


def get_sinusoid_encoding_table(tra_length: int, embed_dims: int) -> jnp.ndarray:
    """Same math as the PyTorch helper. Shape (1, tra_length, embed_dims), float32."""
    def get_position_angle_vec(position):
        return [position / np.power(10000, 2 * (dim // 2) / embed_dims)
                for dim in range(embed_dims)]
    table = np.array([get_position_angle_vec(p) for p in range(tra_length)],
                     dtype=np.float64)
    table[:, 0::2] = np.sin(table[:, 0::2])
    table[:, 1::2] = np.cos(table[:, 1::2])
    return jnp.asarray(table[None, :, :], dtype=jnp.float32)


def _add_pos_kernel(x_ref, pos_ref, o_ref):
    # Pure VPU elementwise add on one tile. pos block has leading dim 1 and
    # broadcasts against x's leading (batch-tile) dim when tb > 1.
    o_ref[...] = x_ref[...] + pos_ref[...]


# Below this output size, let XLA fuse the add into the surrounding graph.
_SMALL_FALLBACK_BYTES = 64 * 1024
# ~2 MiB per input tile -> ~12 MiB live with double buffering (x + pos + out).
_TARGET_TILE_BYTES = 2 << 20
# Explicit scoped-VMEM limit: raises v5e's 16 MiB default, matches the 32 MiB
# default on v6e/v7x, and stays far under every generation's physical VMEM.
_VMEM_LIMIT_BYTES = 32 << 20


def _lane_dense_view(L: int, D: int):
    """Pick a 2-D inner view (R, C) of a contiguous (L, D) slab with C lane-dense
    (a multiple of 128) whenever possible, so output stores are unmasked."""
    if D % 128 == 0:
        return L, D
    if (L * D) % 128 == 0:
        C = 128
        while C < 2048 and (L * D) % (2 * C) == 0:
            C *= 2
        return (L * D) // C, C
    # Fallback: natural layout (masked partial stores, still correct).
    return L, D


def _choose_tiling(B: int, R: int, C: int, itemsize: int):
    """Return ('rows', tr) or ('batch', tb).

    'rows':  per-batch slab is large -> tile rows within a batch, ~2 MiB row tiles.
    'batch': per-batch slab is small -> pack several batch elements per block so the
             tile is not capped at R*C*itemsize bytes.
    Both branches guarantee at least 2 total grid steps when the work is splittable
    (v7x dual-TC + DMA/compute overlap).
    """
    sub = {1: 32, 2: 16}.get(itemsize, 8)     # sublane packing granularity
    slab_bytes = R * C * itemsize
    if slab_bytes >= _TARGET_TILE_BYTES:
        target_rows = max(sub, _TARGET_TILE_BYTES // max(1, C * itemsize))
        tr = max(sub, (target_rows // sub) * sub)
        tr = min(tr, R)
        if B * pl.cdiv(R, tr) < 2 and R >= 2 * sub:
            tr = max(sub, ((R // 2) // sub) * sub)
        return "rows", tr
    tb = max(1, min(B, _TARGET_TILE_BYTES // max(1, slab_bytes)))
    if pl.cdiv(B, tb) < 2 and B >= 2:
        tb = pl.cdiv(B, 2)
    return "batch", tb


def positional_encoding(x: jnp.ndarray, pos_table: jnp.ndarray, *,
                        use_pallas=None, donate_x: bool = False) -> jnp.ndarray:
    """x: (B, L, D); pos_table: (1, tra_length, D) with tra_length >= L."""
    B, L, D = x.shape
    _, T, Dp = pos_table.shape
    if Dp != D:
        raise ValueError(f"embed_dims mismatch: x has {D}, pos_table has {Dp}")
    if L > T:
        raise ValueError(f"sequence length {L} exceeds tra_length {T}")

    pos = pos_table if L == T else pos_table[:, :L, :]
    # No-op when the table was built in x's dtype (recommended via the module ctor);
    # otherwise a one-time convert of the small (1, L, D) table.
    pos = pos.astype(x.dtype)

    itemsize = jnp.dtype(x.dtype).itemsize
    if use_pallas is None:
        use_pallas = (B * L * D * itemsize) >= _SMALL_FALLBACK_BYTES
    if not use_pallas:
        # Tiny inputs: a pallas_call launch would dwarf the KiB-scale add, and when
        # this sits inside a larger jitted graph XLA fuses the add for free.
        return x + pos

    R, C = _lane_dense_view(L, D)
    x_v = x.reshape(B, R, C)        # contiguous reshape; pos reshaped identically,
    pos_v = pos.reshape(1, R, C)    # so rows stay aligned between x and the table.

    mode, t = _choose_tiling(B, R, C, itemsize)
    if mode == "rows":
        tr = t
        # Row-tiles OUTER, batch INNER: the pos block index only changes when the
        # row tile changes, so Pallas skips re-DMA of the pos tile across batch steps.
        grid = (pl.cdiv(R, tr), B)
        in_specs = [
            pl.BlockSpec((1, tr, C), lambda r, b: (b, r, 0)),   # x
            pl.BlockSpec((1, tr, C), lambda r, b: (0, r, 0)),   # pos (reused over batch)
        ]
        out_spec = pl.BlockSpec((1, tr, C), lambda r, b: (b, r, 0))
        dim_sem = ("parallel", "parallel")
    else:
        tb = t
        # Per-batch slab is small: pack tb batch elements per block; pos block index
        # is constant across all steps so it is DMA'd only once.
        grid = (pl.cdiv(B, tb),)
        in_specs = [
            pl.BlockSpec((tb, R, C), lambda i: (i, 0, 0)),      # x
            pl.BlockSpec((1, R, C), lambda i: (0, 0, 0)),       # pos (broadcast in-kernel)
        ]
        out_spec = pl.BlockSpec((tb, R, C), lambda i: (i, 0, 0))
        dim_sem = ("parallel",)

    cost = pl.CostEstimate(
        flops=B * L * D,
        transcendentals=0,
        bytes_accessed=(2 * B * L * D + L * D) * itemsize,
    )

    out_v = pl.pallas_call(
        _add_pos_kernel,
        out_shape=jax.ShapeDtypeStruct((B, R, C), x.dtype),
        grid=grid,
        in_specs=in_specs,
        out_specs=out_spec,
        compiler_params=pltpu.CompilerParams(
            dimension_semantics=dim_sem,
            vmem_limit_bytes=_VMEM_LIMIT_BYTES,
        ),
        cost_estimate=cost,
        # Reuse x's HBM buffer only when the caller actually donates x; otherwise
        # aliasing would force XLA to insert a defensive copy.
        input_output_aliases=({0: 0} if donate_x else {}),
    )(x_v, pos_v)
    return out_v.reshape(B, L, D)


class PositionalEncoding:
    """JAX/Pallas equivalent of the PyTorch PositionalEncoding module."""

    def __init__(self, embed_dims: int, tra_length: int, dtype=jnp.float32):
        # Build and cast the table once at construction (no per-call convert pass);
        # pass the activation dtype here so the per-call astype is a no-op.
        self.pos_table = get_sinusoid_encoding_table(tra_length, embed_dims).astype(dtype)

    def __call__(self, x: jnp.ndarray, *, use_pallas=None, donate_x: bool = False) -> jnp.ndarray:
        return positional_encoding(x, self.pos_table, use_pallas=use_pallas, donate_x=donate_x)


if __name__ == "__main__":
    key = jax.random.PRNGKey(0)
    k1, k2, k3 = jax.random.split(key, 3)

    # Case 1: the module spec's small shape (B=2, L=8, D=32, tra_length=16).
    # Force the Pallas path so the kernel itself is exercised (the default
    # dispatch would hand a 2 KiB add to XLA fusion).
    B, L, D, T = 2, 8, 32, 16
    x1 = jax.random.normal(k1, (B, L, D), dtype=jnp.float32)
    mod1 = PositionalEncoding(embed_dims=D, tra_length=T)
    out1 = jax.block_until_ready(mod1(x1, use_pallas=True))
    ref1 = x1 + mod1.pos_table[:, :L, :]
    np.testing.assert_allclose(np.asarray(out1), np.asarray(ref1), rtol=1e-6, atol=1e-6)

    # Case 2: lane-dense embedding dim (multiple of 128). Small per-batch slab ->
    # exercises the batch-tiled path split across two grid steps.
    B2, L2, D2 = 2, 64, 256
    x2 = jax.random.normal(k2, (B2, L2, D2), dtype=jnp.float32)
    mod2 = PositionalEncoding(embed_dims=D2, tra_length=L2)
    out2 = jax.block_until_ready(mod2(x2, use_pallas=True))
    ref2 = x2 + mod2.pos_table
    np.testing.assert_allclose(np.asarray(out2), np.asarray(ref2), rtol=1e-6, atol=1e-6)

    # Case 3: batch-tiled path with tb > 1 (pos block broadcasts over the leading
    # batch-tile dim inside the kernel).
    B3, L3, D3, T3 = 4, 8, 32, 16
    x3 = jax.random.normal(k3, (B3, L3, D3), dtype=jnp.float32)
    mod3 = PositionalEncoding(embed_dims=D3, tra_length=T3)
    out3 = jax.block_until_ready(mod3(x3, use_pallas=True))
    ref3 = x3 + mod3.pos_table[:, :L3, :]
    np.testing.assert_allclose(np.asarray(out3), np.asarray(ref3), rtol=1e-6, atol=1e-6)

    print("KERNEL_OK")
</pallas_src>

<mosaic_0001>
module attributes {stable_mosaic.version = 11 : i64} {
  func.func @_add_pos_kernel(%arg0: i32, %arg1: memref<1x1x256xf32, #tpu.memory_space<vmem>>, %arg2: memref<1x1x256xf32, #tpu.memory_space<vmem>>, %arg3: memref<1x1x256xf32, #tpu.memory_space<vmem>>) attributes {dimension_semantics = [#tpu.dimension_semantics<parallel>], iteration_bounds = array<i64: 2>, scalar_prefetch = 0 : i64, scratch_operands = 0 : i64, tpu.core_type = #tpu.core_type<tc>, window_params = [{transform_indices = @transform_0, window_bounds = array<i64: 1, 1, 256>}, {pipeline_mode = #tpu.pipeline_mode<synchronous>, transform_indices = @transform_1, window_bounds = array<i64: 1, 1, 256>}, {transform_indices = @transform_2, window_bounds = array<i64: 1, 1, 256>}]} {
    %c0 = arith.constant 0 : index
    %c0_0 = arith.constant 0 : index
    %c0_1 = arith.constant 0 : index
    %0 = vector.load %arg1[%c0, %c0_0, %c0_1] : memref<1x1x256xf32, #tpu.memory_space<vmem>>, vector<1x1x256xf32>
    %c0_2 = arith.constant 0 : index
    %c0_3 = arith.constant 0 : index
    %c0_4 = arith.constant 0 : index
    %1 = vector.load %arg2[%c0_2, %c0_3, %c0_4] : memref<1x1x256xf32, #tpu.memory_space<vmem>>, vector<1x1x256xf32>
    %2 = arith.addf %0, %1 : vector<1x1x256xf32>
    %c0_5 = arith.constant 0 : index
    %c0_6 = arith.constant 0 : index
    %c0_7 = arith.constant 0 : index
    %3 = vector.load %arg3[%c0_5, %c0_6, %c0_7] : memref<1x1x256xf32, #tpu.memory_space<vmem>>, vector<1x1x256xf32>
    tpu.vector_store %arg3[%c0_5, %c0_6, %c0_7], %2 {strides = array<i32>} : memref<1x1x256xf32, #tpu.memory_space<vmem>>, vector<1x1x256xf32>,
    return
  }
  func.func @transform_0(%arg0: i32) -> (i32, i32, i32) {
    %c0_i32 = arith.constant 0 : i32
    %c0_i32_0 = arith.constant 0 : i32
    %c0_i32_1 = arith.constant 0 : i32
    return %arg0, %c0_i32, %c0_i32_0 : i32, i32, i32
  }
  func.func @transform_1(%arg0: i32) -> (i32, i32, i32) {
    %c0_i32 = arith.constant 0 : i32
    %c0_i32_0 = arith.constant 0 : i32
    %c0_i32_1 = arith.constant 0 : i32
    %c0_i32_2 = arith.constant 0 : i32
    return %c0_i32, %c0_i32_0, %c0_i32_1 : i32, i32, i32
  }
  func.func @transform_2(%arg0: i32) -> (i32, i32, i32) {
    %c0_i32 = arith.constant 0 : i32
    %c0_i32_0 = arith.constant 0 : i32
    %c0_i32_1 = arith.constant 0 : i32
    return %arg0, %c0_i32, %c0_i32_0 : i32, i32, i32
  }
}

</mosaic_0001>

<bundles_post_ra>
// kernel: tpu_custom_call.1
= control target key start
LH: loop header
LB: loop body
LE: loop exit
PB: predicated region body
PF: predicated region fallthrough
CT: control target
= control target key end

     0   :  { %7 = vsyncpa [#allocation3], 0  ;;  %s659_s0 = inlined_call_operand.hbm [shape: f32[2,1,256], index: 0, kind: input, shape index: {}]   ;;  %s660_s1 = inlined_call_operand.hbm [shape: f32[1,1,256], index: 1, kind: input, shape index: {}]   ;;  %s661_s2 = inlined_call_operand.hbm [shape: f32[2,1,256], index: 2, kind: output, shape index: {}]  }
   0x1   :  { %9 = vsyncpa [#allocation3 + $0x1], 0 }
   0x2   :  { %10 = vsyncpa [#allocation6], 0 }
   0x3   :  { %11 = vsyncpa [#allocation4], 0 }
   0x4   :  { %13 = vsyncpa [#allocation4 + $0x1], 0  ;;  %s493_s9 = smov 0   ;;  %s495_s10 = smov 0  }
   0x5   :  { %s497_s11 = smov 0   ;;  %s499_s12 = smov 0  }
   0x6 LB: > { %s514_s13 = sadd.s32 4294967295, %s473_s12   ;;  %s276_s14 = sadd.s32 4294967294, %s473_s12   ;;  %s473_s12 = sphi %s499_s12, %s684_s12   ;;  %s469_s11 = sphi %s497_s11, %s683_s11   ;;  %s465_s10 = sphi %s495_s10, %s682_s10   ;;  %s461_s9 = sphi %s493_s9, %s681_s9  }
   0x7   : > { %p39_p0 = scmp.ne.s32.totalorder %s465_s10, %s461_s9  ;;  %p662_p1 = scmp.eq.s32.totalorder %s514_s13, 0 }
   0x8   : > { %p90_p3 = scmp.eq.s32.totalorder %s276_s14, 1  ;;  %p277_p5 = scmp.ge.s32.totalorder %s473_s12, 1 }
   0x9   : > { %p523_p4 = por %p662_p1, %p39_p0  ;;  %p97_p7 = scmp.lt.s32.totalorder %s473_s12, 3 }
   0xa   : > { %p528_p6 = por %p90_p3, %p39_p0  ;;  %s475_s18 = smov [#allocation5]  }
   0xb   : > { %s666_s15 = scalar_select %p523_p4, 1, 0 }
   0xc   : > { %s667_s16 = scalar_select %p528_p6, 1, 0 }
   0xd   : > { %p533_p8 = pnand %p277_p5, %p97_p7  ;;  %s110_s19 = sshll.u32 %s475_s18, 4  ;;  %s111_s19 = int_to_ptr.vmem [resolvable:$true] %s110_s19 }
   0xe   : > { %s541_s20 = sadd.s32 1, %s473_s12   ;;  %s26_s24 = sadd.s32 1, %s469_s11 }
   0xf   : > { %s668_s17 = scalar_select %p533_p8, 1, 0 }
  0x10   : > { %p302_p10 = pneg %p533_p8  ;;  %s23_s22 = ssub.s32 %s473_s12, %s541_s20 }
  0x11   : > { %p551_p12 = scmp.eq.s32.totalorder %s23_s22, 0  ;;  %p33_p13 = scmp.ne.s32.totalorder %s469_s11, %s465_s10 }
  0x12   : > { %p545_p11 = pnand %p302_p10, %p662_p1  ;;  %s362_s25 = scalar_lea.vmem %s111_s19, 32 }
  0x13   : > { %p363_p3 = scmp.ne.s32.totalorder %s111_s19, %s362_s25  ;;  %p370_p9 = scmp.lt.s32.totalorder %s111_s19, %s111_s19 }
  0x14   : > { %p353_p0 = pneg %p545_p11  ;;  %p371_p2 = scmp.lt.s32.totalorder %s362_s25, %s362_s25 }
  0x16   : > { %p365_p5 = pnand %p363_p3, %p353_p0  ;;  %p372_p10 = por %p371_p2, %p370_p9 }
  0x18   : > { %p366_p7 = pneg %p365_p5 }
  0x1a   : > { %p373_p1 = pnand %p372_p10, %p366_p7 }
  0x1c   : > { %376 = shalt.err (!%p373_p1)
}
  0x1d   : > { %305 = dma.hbm_to_vmem [thread:$0]  (!%p545_p11), %s660_s1, 32, %s111_s19, [#allocation6]  }
  0x1e   : > { %s568_s28 = scalar_select %p551_p12, %s469_s11, %s26_s24  }
  0x1f   : > { %p34_p1 = scmp.eq.s32.totalorder %s473_s12, 0  ;;  %p671_p2 = scmp.eq.s32.totalorder %s514_s13, 1 }
  0x20   : > { %p315_p0 = scmp.lt.s32.totalorder %s473_s12, 2  ;;  %s121_s30 = sand.u32 1, %s469_s11  }
  0x21   : > { %p576_p9 = por %p671_p2, %p33_p13  ;;  %p35_p3 = por %p34_p1, %p33_p13 }
  0x22   : > { %s280_s3 = sshll.u32 %s121_s30, 1  ;;  %s292_s4 = sshll.u32 %s473_s12, 5 }
  0x23   : > { %s672_s29 = scalar_select %p576_p9, 1, 0 }
  0x24   : > { %s589_s7 = scalar_lea.hbm %s659_s0, %s292_s4  ;;  %s125_s8 = scalar_lea.vmem [#allocation2], %s280_s3 }
  0x25   : > { %s133_s14 = sshll.u32 %s125_s8, 4  ;;  %p591_p11 = pnand %p315_p0, %p35_p3  ;;  %s134_s14 = int_to_ptr.vmem [resolvable:$true] %s133_s14 }
  0x26   : > { %s122_s19 = scalar_lea.sflag [#allocation3], %s121_s30  ;;  %s377_s21 = scalar_lea.hbm %s589_s7, 32 }
  0x27   : > { %p378_p12 = scmp.ne.s32.totalorder %s589_s7, %s377_s21  ;;  %p379_p13 = pneg %p591_p11 }
  0x28   : > { %s382_s24 = scalar_lea.hbm %s659_s0, 64  ;;  %p383_p10 = scmp.lt.s32.totalorder %s589_s7, %s659_s0 }
  0x29   : > { %p380_p5 = pnand %p379_p13, %p378_p12  ;;  %p384_p1 = scmp.lt.s32.totalorder %s382_s24, %s377_s21 }
  0x2b   : > { %p381_p7 = pneg %p380_p5  ;;  %p385_p2 = por %p384_p1, %p383_p10 }
  0x2d   : > { %p386_p0 = pnand %p385_p2, %p381_p7 }
  0x2f   : > { %389 = shalt.err (!%p386_p0)
}
  0x30   : > { %s390_s27 = scalar_lea.vmem %s134_s14, 32  ;;  %s476_s30 = smov [#allocation2]  }
  0x31   : > { %p391_p3 = scmp.ne.s32.totalorder %s134_s14, %s390_s27  ;;  %s395_s3 = sshll.u32 %s476_s30, 4  ;;  %s396_s3 = int_to_ptr.vmem [resolvable:$false] %s395_s3 }
  0x32   : > { %s397_s4 = scalar_lea.vmem %s396_s3, 64  ;;  %p398_p12 = scmp.lt.s32.totalorder %s134_s14, %s396_s3 }
  0x33   : > { %p393_p6 = pnand %p391_p3, %p379_p13  ;;  %p399_p5 = scmp.lt.s32.totalorder %s397_s4, %s390_s27 }
  0x35   : > { %p394_p9 = pneg %p393_p6  ;;  %p400_p4 = por %p399_p5, %p398_p12 }
  0x37   : > { %p401_p8 = pnand %p400_p4, %p394_p9 }
  0x39   : > { %404 = shalt.err (!%p401_p8)
}
  0x3a   : > { %309 = dma.hbm_to_vmem [thread:$0]  (!%p591_p11), %s589_s7, 32, %s134_s14, %s122_s19  }
  0x3b   : > { %p674_p7 = scmp.ne.s32.totalorder %s668_s17, 0 }
  0x3c   : > { %s612_s5 = sand.u32 (!%p674_p7), 1, %s465_s10   ;;  %p675_p6 = scmp.ne.s32.totalorder (!%p674_p7), %s666_s15, 0 }
  0x3d   : > { %142 = sbr.rel (%p674_p7) target bundleno = 95 (0x5f), region = 28  ;;  %s284_s6 = sshll.u32 (!%p674_p7), %s612_s5, 1 }
  0x3e   : > { %s145_s8 = scalar_lea.sflag (!%p674_p7), [#allocation3], %s612_s5  ;;  %s148_s21 = scalar_lea.vmem (!%p674_p7), [#allocation2], %s284_s6 }
  0x42   : > { %448 = dma.done.wait (%p675_p6), %s145_s8, 32  }
  0x43   : > { %450 = vsyncadd (%p675_p6), %s145_s8, 4294967264  ;;  %p676_p4 = scmp.eq.s32.totalorder %s514_s13, 0 }
  0x45   : > { %452 = dma.done.wait (%p676_p4), [#allocation6], 32   ;;  %p677_p8 = pmov %p676_p4 }
  0x46   : > { %v176_v0 = vlaneseq  ;;  %s172_s17 = scalar_lea.vmem [#allocation7], %s284_s6  ;;  %s293_s14 = sshll.u32 %s514_s13, 5  ;;  %v173_v1 = vld [vmem:[%s148_s21] sm:$0x3]  ;;  %v174_v2 = vld [vmem:[#allocation5] sm:$0x3] }
  0x47   : > { %454 = vsyncadd (%p677_p8), [#allocation6], 4294967264  ;;  %s196_s7 = sshll.u32 %s172_s17, 4  ;;  %v175_v3 = vadd.f32 %v174_v2, %v173_v1  ;;  %s194_s19 = scalar_lea.hbm %s661_s2, %s293_s14  ;;  %s197_s7 = int_to_ptr.vmem [resolvable:$true] %s196_s7 }
  0x48   : > { %vm178_vm0 = vcmp.lt.s32.totalorder %v176_v0, 256  ;;  %s182_s22 = scalar_lea.sflag [#allocation4], %s612_s5  ;;  %s405_s23 = scalar_lea.vmem %s197_s7, 32 }
  0x49   : > { %180 = vst.msk [vmem:[%s172_s17] sm:$0x3] %vm178_vm0, %v175_v3  ;;  %p406_p9 = scmp.ne.s32.totalorder %s197_s7, %s405_s23  ;;  %p678_p11 = scmp.ne.s32.totalorder %s672_s29, 0 }
  0x4a   : > { %s477_s24 = smov [#allocation7]  }
  0x4b   : > { %p407_p13 = pnand %p406_p9, %p678_p11  ;;  %s409_s25 = sshll.u32 %s477_s24, 4  ;;  %s410_s25 = int_to_ptr.vmem [resolvable:$false] %s409_s25 }
  0x4c   : > { %s411_s13 = scalar_lea.vmem %s410_s25, 64  ;;  %p412_p1 = scmp.lt.s32.totalorder %s197_s7, %s410_s25 }
  0x4d   : > { %p408_p10 = pneg %p407_p13  ;;  %p413_p2 = scmp.lt.s32.totalorder %s411_s13, %s405_s23 }
  0x4f   : > { %p414_p0 = por %p413_p2, %p412_p1 }
  0x51   : > { %p415_p3 = pnand %p414_p0, %p408_p10 }
  0x53   : > { %418 = shalt.err (!%p415_p3)
}
  0x54   : > { %s419_s26 = scalar_lea.hbm %s194_s19, 32  ;;  %s423_s3 = scalar_lea.hbm %s661_s2, 64 }
  0x55   : > { %p420_p12 = scmp.ne.s32.totalorder %s194_s19, %s419_s26  ;;  %p424_p6 = scmp.lt.s32.totalorder %s194_s19, %s661_s2 }
  0x56   : > { %p425_p4 = scmp.lt.s32.totalorder %s423_s3, %s419_s26 }
  0x57   : > { %p421_p5 = pnand %p420_p12, %p678_p11 }
  0x58   : > { %p426_p8 = por %p425_p4, %p424_p6 }
  0x59   : > { %p422_p7 = pneg %p421_p5 }
  0x5b   : > { %p427_p9 = pnand %p426_p8, %p422_p7 }
  0x5d   : > { %430 = shalt.err (!%p427_p9)
}
  0x5e   : > { %300 = dma.vmem_to_hbm [thread:$0]  (%p678_p11), %s197_s7, 32, %s194_s19, %s182_s22  }
  0x5f PF: > { %s208_s6 = sand.u32 1, %s461_s9   ;;  %p679_p13 = scmp.ne.s32.totalorder %s667_s16, 0 }
  0x60   : > { %p680_p10 = scmp.ge.s32.totalorder %s473_s12, 2  ;;  %s209_s8 = scalar_lea.sflag [#allocation4], %s208_s6 }
  0x62   : > { %p311_p1 = pnand %p680_p10, %p679_p13 }
  0x64   : > { %p312_p2 = pneg %p311_p1 }
  0x66   : > { %456 = dma.done.wait (%p312_p2), %s209_s8, 32  }
  0x67   : > { %458 = vsyncadd (%p312_p2), %s209_s8, 4294967264  ;;  %p16_p0 = scmp.ge.s32.totalorder %s541_s20, 4   ;;  %s681_s9 = smov %s465_s10 }
  0x68   : > { %s682_s10 = smov %s469_s11  ;;  %s683_s11 = smov %s568_s28 }
  0x69   : > { %s684_s12 = smov %s541_s20  ;;  %18 = sbr.rel (!%p16_p0) target bundleno = 6 (0x6), region = 77 }
  0x6e   :  { %214 = vsyncpa [#allocation3], 1 }
  0x6f   :  { %216 = vsyncpa [#allocation3 + $0x1], 1 }
  0x70   :  { %217 = vsyncpa [#allocation6], 1 }
  0x71   :  { %218 = vsyncpa [#allocation4], 1 }
  0x72   :  { %220 = vsyncpa [#allocation4 + $0x1], 1 }

</bundles_post_ra>
